<compile_context>
chip_gen: v6e
topology: v6e:2x2x1
jax: 0.10.0
libtpu: 0.0.40
codegen_flags: <defaults>
</compile_context>

<pallas_src>
import functools

import jax
import jax.numpy as jnp
from jax.experimental import pallas as pl
from jax.experimental.pallas import tpu as pltpu

LANE = 128
BF16 = jnp.bfloat16
F32 = jnp.float32
VMEM_SPEC = pl.BlockSpec(memory_space=pltpu.MemorySpace.VMEM)


def _round_up(v, m):
    return (v + m - 1) // m * m


def _vmem_budget_bytes():
    """~75% of this generation's per-core VMEM (v5e/v6e 128 MiB, v7x 64 MiB)."""
    cap = None
    try:
        info = pltpu.get_tpu_info()
        for name in ("vmem_capacity_bytes", "vmem_bytes", "vmem_size_bytes"):
            v = getattr(info, name, None)
            if v:
                cap = int(v)
                break
    except Exception:
        cap = None
    if cap is None:
        cap = 64 << 20  # conservative fallback: v7x physical per-TC VMEM
    return (cap * 3) // 4


# --------------------- fused all-resident kernel (small N) ------------------ #

def gcn_fused_kernel(a_ref, x_ref, w0_ref, ws_ref, out_ref, *, num_layers):
    """All GCN layers fused; bf16 MXU operands, f32 accumulation."""
    a = a_ref[...]                                                  # bf16 (N,N)
    z = jnp.dot(x_ref[...], w0_ref[...], preferred_element_type=F32)
    h = jnp.maximum(jnp.dot(a, z.astype(BF16), preferred_element_type=F32), 0.0)

    def layer(i, h):
        z = jnp.dot(h.astype(BF16), ws_ref[i], preferred_element_type=F32)
        return jnp.maximum(
            jnp.dot(a, z.astype(BF16), preferred_element_type=F32), 0.0)

    h = jax.lax.fori_loop(0, num_layers - 1, layer, h, unroll=True)
    out_ref[...] = h.astype(out_ref.dtype)


# ------------------ row-tiled aggregation kernel (large N) ------------------ #

def agg_relu_kernel(a_ref, z_ref, out_ref):
    """out rows = relu(A_panel @ z); A streamed by the auto-pipelined grid."""
    acc = jnp.dot(a_ref[...], z_ref[...], preferred_element_type=F32)
    out_ref[...] = jnp.maximum(acc, 0.0).astype(out_ref.dtype)


def _pick_row_tile(n_pad, h_pad, budget):
    def foot(tm):
        return (2 * tm * n_pad * 2          # A panel (bf16), double-buffered
                + 2 * n_pad * h_pad * 2     # z (bf16), conservatively x2
                + 2 * tm * h_pad * 4        # out panel (f32), double-buffered
                + (8 << 20))                # headroom for Mosaic scratch
    cands = [c for c in (512, 256, 128) if n_pad % c == 0 and n_pad // c >= 2]
    if not cands:
        cands = [128]
    for tm in cands:
        if foot(tm) <= budget:
            return tm, foot(tm)
    # TODO(synk): if even a 128-row panel of A misses the budget (N_pad >~100k),
    # also tile the contraction (column) axis of A.
    return cands[-1], foot(cands[-1])


def _tiled_forward(a_bf, x_bf, w0_p, ws_p, num_layers, n_pad, h_pad, budget):
    tm, foot = _pick_row_tile(n_pad, h_pad, budget)
    grid = (n_pad // tm,)
    vmem_limit = max(32 << 20, min(foot, budget))
    flops = int(2 * n_pad * n_pad * h_pad)
    bytes_acc = int(n_pad * n_pad * 2 + grid[0] * n_pad * h_pad * 2
                    + n_pad * h_pad * 4)

    def aggregate(z_bf, out_dtype):
        return pl.pallas_call(
            agg_relu_kernel,
            out_shape=jax.ShapeDtypeStruct((n_pad, h_pad), out_dtype),
            grid=grid,
            in_specs=[pl.BlockSpec((tm, n_pad), lambda i: (i, 0)),
                      pl.BlockSpec((n_pad, h_pad), lambda i: (0, 0))],
            out_specs=pl.BlockSpec((tm, h_pad), lambda i: (i, 0)),
            compiler_params=pltpu.CompilerParams(
                dimension_semantics=("parallel",),
                vmem_limit_bytes=vmem_limit),
            cost_estimate=pl.CostEstimate(flops=flops, transcendentals=0,
                                          bytes_accessed=bytes_acc),
        )(a_bf, z_bf)

    # layer 0: z = x @ W0 (tiny; XLA MXU), then streamed aggregation
    z = jnp.dot(x_bf, w0_p, preferred_element_type=F32).astype(BF16)
    h = aggregate(z, BF16 if num_layers > 1 else F32)
    # layers 1..L-1
    for i in range(num_layers - 1):
        z = jnp.dot(h, ws_p[i], preferred_element_type=F32).astype(BF16)
        h = aggregate(z, F32 if i == num_layers - 2 else BF16)
    return h


# ------------------------------ JAX wrapper -------------------------------- #

@functools.partial(jax.jit, static_argnames=("force_tiled",))
def sp_skip_nodefeats_gcn(Ahat, node_feats, w_list, force_tiled=False):
    """Pallas forward of Sp_Skip_NodeFeats_GCN (activation = ReLU)."""
    num_layers = len(w_list)
    N, F = node_feats.shape
    H_out = w_list[-1].shape[1]
    hidden_dims = ([w.shape[1] for w in w_list]
                   + [w.shape[0] for w in w_list[1:]])
    n_pad = _round_up(N, LANE)
    f_pad = _round_up(F, LANE)
    h_pad = _round_up(max(hidden_dims), LANE)
    n_rest = max(num_layers - 1, 1)

    # bf16 padded operands (layout plumbing; zero padding preserves the math).
    # TODO(synk): in a production deployment cache these padded bf16 copies at
    # module-setup time instead of rebuilding them on every call.
    a_bf = jnp.pad(Ahat.astype(BF16), ((0, n_pad - N), (0, n_pad - N)))
    x_bf = jnp.pad(node_feats.astype(BF16), ((0, n_pad - N), (0, f_pad - F)))
    w0_p = jnp.pad(w_list[0].astype(BF16),
                   ((0, f_pad - w_list[0].shape[0]),
                    (0, h_pad - w_list[0].shape[1])))
    if num_layers > 1:
        ws_p = jnp.stack([
            jnp.pad(w.astype(BF16), ((0, h_pad - w.shape[0]),
                                     (0, h_pad - w.shape[1])))
            for w in w_list[1:]])
    else:
        ws_p = jnp.zeros((1, h_pad, h_pad), BF16)

    budget = _vmem_budget_bytes()
    fused_live = ((n_pad * n_pad + n_pad * f_pad) * 2             # A, x (bf16)
                  + (f_pad * h_pad + n_rest * h_pad * h_pad) * 2  # weights
                  + n_pad * h_pad * 4                             # output (f32)
                  + 3 * n_pad * h_pad * 4)                        # h/z temps
    fused_need = (fused_live * 3) // 2 + (8 << 20)
    use_tiled = bool(force_tiled) or fused_need > budget

    if use_tiled:
        h_last = _tiled_forward(a_bf, x_bf, w0_p, ws_p, num_layers,
                                n_pad, h_pad, budget)
    else:
        flops = int(2 * n_pad * f_pad * h_pad
                    + num_layers * 2 * n_pad * n_pad * h_pad
                    + (num_layers - 1) * 2 * n_pad * h_pad * h_pad)
        bytes_acc = int((n_pad * n_pad + n_pad * f_pad + f_pad * h_pad
                         + n_rest * h_pad * h_pad) * 2 + n_pad * h_pad * 4)
        vmem_limit = max(32 << 20, min(fused_need, budget))
        h_last = pl.pallas_call(
            functools.partial(gcn_fused_kernel, num_layers=num_layers),
            out_shape=jax.ShapeDtypeStruct((n_pad, h_pad), F32),
            in_specs=[VMEM_SPEC] * 4,
            out_specs=VMEM_SPEC,
            compiler_params=pltpu.CompilerParams(vmem_limit_bytes=vmem_limit),
            cost_estimate=pl.CostEstimate(flops=flops, transcendentals=0,
                                          bytes_accessed=bytes_acc),
        )(a_bf, x_bf, w0_p, ws_p)

    last_l = h_last[:N, :H_out].astype(F32)
    # Skip connection concatenates the RAW (f32) node features, as the module.
    # TODO(synk): could be fused as a second kernel output; kept in the wrapper
    # (fused by XLA under this jit) so the skip features stay exact f32.
    return jnp.concatenate([last_l, node_feats.astype(F32)], axis=1)


def sp_skip_nodefeats_gcn_ref(Ahat, node_feats, w_list):
    """Pure-JAX f32 reference (exactly the PyTorch forward with ReLU)."""
    A = Ahat.astype(F32)
    x = node_feats.astype(F32)
    h = jnp.maximum(A @ (x @ w_list[0].astype(F32)), 0.0)
    for i in range(1, len(w_list)):
        h = jnp.maximum(A @ (h @ w_list[i].astype(F32)), 0.0)
    return jnp.concatenate([h, x], axis=1)


# ---------------------------------- main ------------------------------------ #

def _make_ahat(key, n):
    logits = jax.random.uniform(key, (n, n))
    adj = (logits < 0.2).astype(F32)
    adj = jnp.maximum(adj, adj.T)
    adj = jnp.clip(adj + jnp.eye(n, dtype=F32), 0.0, 1.0)
    d = jax.lax.rsqrt(adj.sum(axis=1))
    return adj * d[:, None] * d[None, :]


def _make_weights(key, num_layers, feats, h1, h2):
    dims = [(feats, h1)] + [(h1, h2)] * (num_layers - 1)
    keys = jax.random.split(key, num_layers)
    ws = []
    for kk, (din, dout) in zip(keys, dims):
        stdv = 1.0 / (dout ** 0.5)
        ws.append(jax.random.uniform(kk, (din, dout), F32, -stdv, stdv))
    return ws


if __name__ == "__main__":
    key = jax.random.PRNGKey(0)
    k1, k2, k3, k4, k5, k6 = jax.random.split(key, 6)

    # --- test 1: small graph -> fused, all-VMEM-resident kernel --------------
    n1, f1, h1 = 16, 8, 32
    Ahat = _make_ahat(k1, n1)
    feats = jax.random.normal(k2, (n1, f1), F32)
    ws = _make_weights(k3, 3, f1, h1, h1)
    out = jax.block_until_ready(sp_skip_nodefeats_gcn(Ahat, feats, ws))
    ref = sp_skip_nodefeats_gcn_ref(Ahat, feats, ws)
    assert out.shape == (n1, h1 + f1)
    # bf16 MXU operands with f32 accumulation -> relaxed tolerance vs f32 ref.
    assert jnp.allclose(out, ref, atol=2e-2, rtol=2e-2), "fused path mismatch"

    # --- test 2: larger graph -> row-tiled streamed-A path (parallel grid) ---
    n2, f2, h2 = 300, 16, 64
    Ahat2 = _make_ahat(k4, n2)
    feats2 = jax.random.normal(k5, (n2, f2), F32)
    ws2 = _make_weights(k6, 2, f2, h2, h2)
    out2 = jax.block_until_ready(
        sp_skip_nodefeats_gcn(Ahat2, feats2, ws2, force_tiled=True))
    ref2 = sp_skip_nodefeats_gcn_ref(Ahat2, feats2, ws2)
    assert out2.shape == (n2, h2 + f2)
    assert jnp.allclose(out2, ref2, atol=2e-2, rtol=2e-2), "tiled path mismatch"

    print("KERNEL_OK")
</pallas_src>

<mosaic_0001>
module attributes {stable_mosaic.version = 11 : i64} {
  func.func @gcn_fused_kernel(%arg0: memref<128x128xbf16, #tpu.memory_space<vmem>>, %arg1: memref<128x128xbf16, #tpu.memory_space<vmem>>, %arg2: memref<128x128xbf16, #tpu.memory_space<vmem>>, %arg3: memref<2x128x128xbf16, #tpu.memory_space<vmem>>, %arg4: memref<128x128xf32, #tpu.memory_space<vmem>>) attributes {dimension_semantics = [], scalar_prefetch = 0 : i64, scratch_operands = 0 : i64, tpu.core_type = #tpu.core_type<tc>} {
    %c0 = arith.constant 0 : index
    %c0_0 = arith.constant 0 : index
    %0 = vector.load %arg0[%c0, %c0_0] : memref<128x128xbf16, #tpu.memory_space<vmem>>, vector<128x128xbf16>
    %c0_1 = arith.constant 0 : index
    %c0_2 = arith.constant 0 : index
    %1 = vector.load %arg1[%c0_1, %c0_2] : memref<128x128xbf16, #tpu.memory_space<vmem>>, vector<128x128xbf16>
    %c0_3 = arith.constant 0 : index
    %c0_4 = arith.constant 0 : index
    %2 = vector.load %arg2[%c0_3, %c0_4] : memref<128x128xbf16, #tpu.memory_space<vmem>>, vector<128x128xbf16>
    %cst = arith.constant dense<0.000000e+00> : vector<128x128xf32>
    %3 = tpu.matmul %1, %2, %cst {dimension_numbers = #tpu.dot_dimension_numbers<[1], [0], [0], [1], [0, 0, 1, 1], [], []>} : vector<128x128xbf16>, vector<128x128xbf16>, vector<128x128xf32> -> vector<128x128xf32>
    %4 = arith.truncf %3 : vector<128x128xf32> to vector<128x128xbf16>
    %cst_5 = arith.constant dense<0.000000e+00> : vector<128x128xf32>
    %5 = tpu.matmul %0, %4, %cst_5 {dimension_numbers = #tpu.dot_dimension_numbers<[1], [0], [0], [1], [0, 0, 1, 1], [], []>} : vector<128x128xbf16>, vector<128x128xbf16>, vector<128x128xf32> -> vector<128x128xf32>
    %cst_6 = arith.constant 0.000000e+00 : f32
    %6 = vector.broadcast %cst_6 : f32 to vector<128x128xf32>
    %7 = arith.maximumf %5, %6 : vector<128x128xf32>
    %c0_i32 = arith.constant 0 : i32
    %8 = arith.truncf %7 : vector<128x128xf32> to vector<128x128xbf16>
    %9 = arith.index_cast %c0_i32 : i32 to index
    %c0_7 = arith.constant 0 : index
    %c0_8 = arith.constant 0 : index
    %10 = vector.load %arg3[%9, %c0_7, %c0_8] : memref<2x128x128xbf16, #tpu.memory_space<vmem>>, vector<1x128x128xbf16>
    %11 = vector.shape_cast %10 : vector<1x128x128xbf16> to vector<128x128xbf16>
    %cst_9 = arith.constant dense<0.000000e+00> : vector<128x128xf32>
    %12 = tpu.matmul %8, %11, %cst_9 {dimension_numbers = #tpu.dot_dimension_numbers<[1], [0], [0], [1], [0, 0, 1, 1], [], []>} : vector<128x128xbf16>, vector<128x128xbf16>, vector<128x128xf32> -> vector<128x128xf32>
    %13 = arith.truncf %12 : vector<128x128xf32> to vector<128x128xbf16>
    %cst_10 = arith.constant dense<0.000000e+00> : vector<128x128xf32>
    %14 = tpu.matmul %0, %13, %cst_10 {dimension_numbers = #tpu.dot_dimension_numbers<[1], [0], [0], [1], [0, 0, 1, 1], [], []>} : vector<128x128xbf16>, vector<128x128xbf16>, vector<128x128xf32> -> vector<128x128xf32>
    %cst_11 = arith.constant 0.000000e+00 : f32
    %15 = vector.broadcast %cst_11 : f32 to vector<128x128xf32>
    %16 = arith.maximumf %14, %15 : vector<128x128xf32>
    %c1_i32 = arith.constant 1 : i32
    %17 = arith.truncf %16 : vector<128x128xf32> to vector<128x128xbf16>
    %18 = arith.index_cast %c1_i32 : i32 to index
    %c0_12 = arith.constant 0 : index
    %c0_13 = arith.constant 0 : index
    %19 = vector.load %arg3[%18, %c0_12, %c0_13] : memref<2x128x128xbf16, #tpu.memory_space<vmem>>, vector<1x128x128xbf16>
    %20 = vector.shape_cast %19 : vector<1x128x128xbf16> to vector<128x128xbf16>
    %cst_14 = arith.constant dense<0.000000e+00> : vector<128x128xf32>
    %21 = tpu.matmul %17, %20, %cst_14 {dimension_numbers = #tpu.dot_dimension_numbers<[1], [0], [0], [1], [0, 0, 1, 1], [], []>} : vector<128x128xbf16>, vector<128x128xbf16>, vector<128x128xf32> -> vector<128x128xf32>
    %22 = arith.truncf %21 : vector<128x128xf32> to vector<128x128xbf16>
    %cst_15 = arith.constant dense<0.000000e+00> : vector<128x128xf32>
    %23 = tpu.matmul %0, %22, %cst_15 {dimension_numbers = #tpu.dot_dimension_numbers<[1], [0], [0], [1], [0, 0, 1, 1], [], []>} : vector<128x128xbf16>, vector<128x128xbf16>, vector<128x128xf32> -> vector<128x128xf32>
    %cst_16 = arith.constant 0.000000e+00 : f32
    %24 = vector.broadcast %cst_16 : f32 to vector<128x128xf32>
    %25 = arith.maximumf %23, %24 : vector<128x128xf32>
    %c2_i32 = arith.constant 2 : i32
    %c0_17 = arith.constant 0 : index
    %c0_18 = arith.constant 0 : index
    %26 = vector.load %arg4[%c0_17, %c0_18] : memref<128x128xf32, #tpu.memory_space<vmem>>, vector<128x128xf32>
    tpu.vector_store %arg4[%c0_17, %c0_18], %25 {strides = array<i32>} : memref<128x128xf32, #tpu.memory_space<vmem>>, vector<128x128xf32>,
    return
  }
}

</mosaic_0001>

<bundles_post_ra>
// kernel: sp_skip_nodefeats_gcn.1
= control target key start
LH: loop header
LB: loop body
LE: loop exit
PB: predicated region body
PF: predicated region fallthrough
CT: control target
= control target key end

     0   :  { %s1646_s2 = inlined_call_operand.vmem [shape: bf16[128,128], index: 2, kind: input, shape index: {}]   ;;  %s1647_s1 = inlined_call_operand.vmem [shape: bf16[128,128], index: 1, kind: input, shape index: {}]   ;;  %s1648_s0 = inlined_call_operand.vmem [shape: bf16[128,128], index: 0, kind: input, shape index: {}]   ;;  %s1649_s3 = inlined_call_operand.vmem [shape: bf16[2,128,128], index: 3, kind: input, shape index: {}]   ;;  %s1650_s4 = inlined_call_operand.vmem [shape: f32[128,128], index: 4, kind: output, shape index: {}]  }
   0x1   :  { %v1373_v0 = vld [vmem:[%s1646_s2 + $0x38] sm:$0xff]   ;;  %v1374_v1 = vld [vmem:[%s1646_s2 + $0x30] sm:$0xff]   ;;  %v1375_v2 = vld [vmem:[%s1646_s2 + $0x28] sm:$0xff]  }
   0x2   :  { %1181 = vmatprep.subr.bf16.mxu0 %v1373_v0  ;;  %v1376_v3 = vld [vmem:[%s1646_s2 + $0x20] sm:$0xff]   ;;  %v1377_v5 = vld [vmem:[%s1646_s2 + $0x18] sm:$0xff]   ;;  %v1378_v6 = vld [vmem:[%s1646_s2 + $0x10] sm:$0xff]  }
   0x3   :  { %1182 = vmatpush3.bf16.msra.mxu0 %v1373_v0  ;;  %v1381_v4 = vld [vmem:[%s1647_s1] sm:$0xff]   ;;  %v1379_v7 = vld [vmem:[%s1646_s2 + $0x8] sm:$0xff]   ;;  %v1383_v10 = vld [vmem:[%s1647_s1 + $0x10] sm:$0xff]  }
   0x4   :  { %1183 = vmatprep.subr.bf16.mxu0 %v1374_v1  ;;  %1197 = vmatprep.mubr.bf16.mxu0 %v1381_v4  ;;  %v1380_v8 = vld [vmem:[%s1646_s2] sm:$0xff]   ;;  %v1382_v9 = vld [vmem:[%s1647_s1 + $0x8] sm:$0xff]   ;;  %v1384_v11 = vld [vmem:[%s1647_s1 + $0x18] sm:$0xff]  }
   0x5   :  { %v1385_v12 = vld [vmem:[%s1647_s1 + $0x20] sm:$0xff]   ;;  %v1386_v13 = vld [vmem:[%s1647_s1 + $0x28] sm:$0xff]   ;;  %v1387_v14 = vld [vmem:[%s1647_s1 + $0x30] sm:$0xff]  }
   0x6   :  { %v1388_v15 = vld [vmem:[%s1647_s1 + $0x38] sm:$0xff]   ;;  %v1489_v16 = vld [vmem:[%s1648_s0] sm:$0xff]   ;;  %v1398_v18 = vld [vmem:[%s1649_s3 + $0x30] sm:$0xff]  }
   0x7   :  { %1184 = vmatpush3.bf16.msra.mxu0 %v1374_v1  ;;  %1229 = vmatprep.mubr.bf16.mxu1 %v1489_v16  ;;  %v1397_v17 = vld [vmem:[%s1649_s3 + $0x38] sm:$0xff]   ;;  %v1399_v19 = vld [vmem:[%s1649_s3 + $0x28] sm:$0xff]   ;;  %v1400_v20 = vld [vmem:[%s1649_s3 + $0x20] sm:$0xff]  }
   0x8   :  { %1185 = vmatprep.subr.bf16.mxu0 %v1375_v2  ;;  %v1401_v21 = vld [vmem:[%s1649_s3 + $0x18] sm:$0xff]   ;;  %v1510_v46 = vld [vmem:[%s1648_s0 + $0x8] sm:$0xff]   ;;  %v1515_v47 = vld [vmem:[%s1648_s0 + $0x10] sm:$0xff]  }
   0x9   :  { %v1522_v48 = vld [vmem:[%s1648_s0 + $0x18] sm:$0xff]   ;;  %v1527_v49 = vld [vmem:[%s1648_s0 + $0x20] sm:$0xff]   ;;  %v1534_v50 = vld [vmem:[%s1648_s0 + $0x28] sm:$0xff]  }
   0xa   :  { %v1539_v51 = vld [vmem:[%s1648_s0 + $0x30] sm:$0xff]   ;;  %v1546_v52 = vld [vmem:[%s1648_s0 + $0x38] sm:$0xff]   ;;  %v1403_v54 = vld [vmem:[%s1649_s3 + $0x8] sm:$0xff]  }
   0xb   :  { %1186 = vmatpush3.bf16.msra.mxu0 %v1375_v2  ;;  %v1402_v53 = vld [vmem:[%s1649_s3 + $0x10] sm:$0xff]   ;;  %v1404_v55 = vld [vmem:[%s1649_s3] sm:$0xff]  }
   0xc   :  { %1187 = vmatprep.subr.bf16.mxu0 %v1376_v3 }
   0xf   :  { %1188 = vmatpush3.bf16.msra.mxu0 %v1376_v3 }
  0x10   :  { %1189 = vmatprep.subr.bf16.mxu0 %v1377_v5 }
  0x13   :  { %1190 = vmatpush3.bf16.msra.mxu0 %v1377_v5 }
  0x14   :  { %1191 = vmatprep.subr.bf16.mxu0 %v1378_v6 }
  0x17   :  { %1192 = vmatpush3.bf16.msra.mxu0 %v1378_v6 }
  0x18   :  { %1193 = vmatprep.subr.bf16.mxu0 %v1379_v7 }
  0x1b   :  { %1194 = vmatpush3.bf16.msra.mxu0 %v1379_v7 }
  0x1c   :  { %1195 = vmatprep.subr.bf16.mxu0 %v1380_v8 }
  0x1f   :  { %1196 = vmatpush3.bf16.msra.mxu0 %v1380_v8 }
  0x20   :  { %1245 = vmatprep.subr.bf16.mxu0 %v1397_v17 }
  0x22   :  { %1198 = vmatmul.mubr.bf16.vlgmr.msra.gmra.mxu0 %v1382_v9 }
  0x23   :  { %1201 = vmatprep.mubr.bf16.mxu0 %v1383_v10  ;;  %1246 = vmatpush3.bf16.msra.mxu0 %v1397_v17 }
  0x24   :  { %1247 = vmatprep.subr.bf16.mxu0 %v1398_v18 }
  0x27   :  { %1248 = vmatpush3.bf16.msra.mxu0 %v1398_v18 }
  0x28   :  { %1249 = vmatprep.subr.bf16.mxu0 %v1399_v19 }
  0x2a   :  { %1202 = vmatmul.mubr.bf16.gmra.mxu0 %v1384_v11 }
  0x2b   :  { %1205 = vmatprep.mubr.bf16.mxu0 %v1385_v12  ;;  %1250 = vmatpush3.bf16.msra.mxu0 %v1399_v19 }
  0x2c   :  { %1251 = vmatprep.subr.bf16.mxu0 %v1400_v20 }
  0x2f   :  { %1252 = vmatpush3.bf16.msra.mxu0 %v1400_v20 }
  0x30   :  { %1253 = vmatprep.subr.bf16.mxu0 %v1401_v21 }
  0x32   :  { %1206 = vmatmul.mubr.bf16.gmra.mxu0 %v1386_v13 }
  0x33   :  { %1209 = vmatprep.mubr.bf16.mxu0 %v1387_v14  ;;  %1254 = vmatpush3.bf16.msra.mxu0 %v1401_v21 }
  0x34   :  { %1255 = vmatprep.subr.bf16.mxu0 %v1402_v53 }
  0x37   :  { %1256 = vmatpush3.bf16.msra.mxu0 %v1402_v53 }
  0x38   :  { %1257 = vmatprep.subr.bf16.mxu0 %v1403_v54 }
  0x3a   :  { %1210 = vmatmul.mubr.bf16.gmra.mxu0 %v1388_v15 }
  0x3b   :  { %1258 = vmatpush3.bf16.msra.mxu0 %v1403_v54 }
  0x3c   :  { %1259 = vmatprep.subr.bf16.mxu0 %v1404_v55 }
  0x3f   :  { %1260 = vmatpush3.bf16.msra.mxu0 %v1404_v55 }
  0xe2   :  { %v1199_v22 = vpop.f32.mrf.mxu0 }
  0xe4   :  { %v196_v23 = vpop.f32.mrf.mxu0 }
  0xe6   :  { %v1200_v24 = vpop.f32.mrf.mxu0 }
  0xe7   :  { %v260_v44 = vpack.c.bf16 %v1200_v24, %v1199_v22 }
  0xe8   :  { %v199_v25 = vpop.f32.mrf.mxu0 }
  0xe9   :  { %v259_v45 = vpack.c.bf16 %v199_v25, %v196_v23 }
  0xea   :  { %v1203_v26 = vpop.f32.mrf.mxu0 }
  0xec   :  { %v212_v27 = vpop.f32.mrf.mxu0 }
  0xee   :  { %v1204_v28 = vpop.f32.mrf.mxu0 }
  0xef   :  { %v262_v42 = vpack.c.bf16 %v1204_v28, %v1203_v26 }
  0xf0   :  { %v215_v29 = vpop.f32.mrf.mxu0 }
  0xf1   :  { %v261_v43 = vpack.c.bf16 %v215_v29, %v212_v27 }
  0xf2   :  { %v1207_v30 = vpop.f32.mrf.mxu0 }
  0xf4   :  { %v228_v31 = vpop.f32.mrf.mxu0 }
  0xf6   :  { %v1208_v32 = vpop.f32.mrf.mxu0 }
  0xf7   :  { %v264_v40 = vpack.c.bf16 %v1208_v32, %v1207_v30 }
  0xf8   :  { %v231_v33 = vpop.f32.mrf.mxu0 }
  0xf9   :  { %v263_v41 = vpack.c.bf16 %v231_v33, %v228_v31  ;;  %v1405_v33 = vld [vmem:[%s1649_s3 + $0x78] sm:$0xff]  }
  0xfa   :  { %v1211_v34 = vpop.f32.mrf.mxu0  ;;  %1309 = vmatprep.subr.bf16.mxu0 %v1405_v33 }
  0xfc   :  { %v244_v35 = vpop.f32.mrf.mxu0 }
  0xfe   :  { %v1212_v36 = vpop.f32.mrf.mxu0 }
  0xff   :  { %v266_v37 = vpack.c.bf16 %v1212_v36, %v1211_v34  ;;  %v1406_v34 = vld [vmem:[%s1649_s3 + $0x70] sm:$0xff]   ;;  %v1408_v36 = vld [vmem:[%s1649_s3 + $0x60] sm:$0xff]  }
 0x100   :  { %v247_v38 = vpop.f32.mrf.mxu0 }
 0x101   :  { %v265_v39 = vpack.c.bf16 %v247_v38, %v244_v35  ;;  %1213 = vmatprep.subr.bf16.mxu1 %v266_v37  ;;  %v1407_v35 = vld [vmem:[%s1649_s3 + $0x68] sm:$0xff]  }
 0x102   :  { %1214 = vmatpush3.bf16.msra.mxu1 %v266_v37  ;;  %v1409_v37 = vld [vmem:[%s1649_s3 + $0x58] sm:$0xff]  }
 0x103   :  { %1215 = vmatprep.subr.bf16.mxu1 %v265_v39 }
 0x106   :  { %1216 = vmatpush3.bf16.msra.mxu1 %v265_v39 }
 0x107   :  { %1217 = vmatprep.subr.bf16.mxu1 %v264_v40 }
 0x10a   :  { %1218 = vmatpush3.bf16.msra.mxu1 %v264_v40 }
 0x10b   :  { %1219 = vmatprep.subr.bf16.mxu1 %v263_v41 }
 0x10e   :  { %1220 = vmatpush3.bf16.msra.mxu1 %v263_v41 }
 0x10f   :  { %1221 = vmatprep.subr.bf16.mxu1 %v262_v42 }
 0x112   :  { %1222 = vmatpush3.bf16.msra.mxu1 %v262_v42 }
 0x113   :  { %1223 = vmatprep.subr.bf16.mxu1 %v261_v43 }
 0x116   :  { %1224 = vmatpush3.bf16.msra.mxu1 %v261_v43 }
 0x117   :  { %1225 = vmatprep.subr.bf16.mxu1 %v260_v44 }
 0x11a   :  { %1226 = vmatpush3.bf16.msra.mxu1 %v260_v44 }
 0x11b   :  { %1227 = vmatprep.subr.bf16.mxu1 %v259_v45 }
 0x11e   :  { %1228 = vmatpush3.bf16.msra.mxu1 %v259_v45 }
 0x121   :  { %1230 = vmatmul.mubr.bf16.vlgmr.msra.gmra.mxu1 %v1510_v46 }
 0x122   :  { %1233 = vmatprep.mubr.bf16.mxu1 %v1515_v47 }
 0x129   :  { %1234 = vmatmul.mubr.bf16.gmra.mxu1 %v1522_v48 }
 0x12a   :  { %1237 = vmatprep.mubr.bf16.mxu1 %v1527_v49 }
 0x131   :  { %1238 = vmatmul.mubr.bf16.gmra.mxu1 %v1534_v50 }
 0x132   :  { %1241 = vmatprep.mubr.bf16.mxu1 %v1539_v51 }
 0x139   :  { %1242 = vmatmul.mubr.bf16.gmra.mxu1 %v1546_v52 }
 0x13a   :  { %1293 = vmatprep.mubr.bf16.mxu1 %v1489_v16 }
 0x1e1   :  { %v1231_v56 = vpop.f32.mrf.mxu1 }
 0x1e2   :  { %v414_v63 = vmax.f32 %v1231_v56, 0.0 }
 0x1e3   :  { %v349_v57 = vpop.f32.mrf.mxu1 }
 0x1e4   :  { %v412_v61 = vmax.f32 %v349_v57, 0.0 }
 0x1e5   :  { %v1232_v58 = vpop.f32.mrf.mxu1 }
 0x1e6   :  { %v415_v59 = vmax.f32 %v1232_v58, 0.0 }
 0x1e7   :  { %v352_v60 = vpop.f32.mrf.mxu1 }
 0x1e8   :  { %v413_v62 = vmax.f32 %v352_v60, 0.0  ;;  %v429_v2 = vpack.c.bf16 %v415_v59, %v414_v63 }
 0x1e9   :  { %v1235_v0 = vpop.f32.mrf.mxu1 }
 0x1ea   :  { %v428_v1 = vpack.c.bf16 %v413_v62, %v412_v61  ;;  %v418_v9 = vmax.f32 %v1235_v0, 0.0 }
 0x1eb   :  { %v365_v3 = vpop.f32.mrf.mxu1 }
 0x1ec   :  { %1261 = vmatprep.mubr.bf16.mxu0 %v428_v1  ;;  %v416_v7 = vmax.f32 %v365_v3, 0.0 }
 0x1ed   :  { %v1236_v4 = vpop.f32.mrf.mxu1  ;;  %1262 = vmatmul.mubr.bf16.vlgmr.msra.gmra.mxu0 %v429_v2 }
 0x1ee   :  { %v419_v5 = vmax.f32 %v1236_v4, 0.0  ;;  %1310 = vmatpush3.bf16.msra.mxu0 %v1405_v33 }
 0x1ef   :  { %v368_v6 = vpop.f32.mrf.mxu1  ;;  %1311 = vmatprep.subr.bf16.mxu0 %v1406_v34 }
 0x1f0   :  { %v417_v8 = vmax.f32 %v368_v6, 0.0  ;;  %v431_v12 = vpack.c.bf16 %v419_v5, %v418_v9  ;;  %v1410_v5 = vld [vmem:[%s1649_s3 + $0x50] sm:$0xff]   ;;  %v1411_v6 = vld [vmem:[%s1649_s3 + $0x48] sm:$0xff]  }
 0x1f1   :  { %v1239_v10 = vpop.f32.mrf.mxu1 }
 0x1f2   :  { %v430_v11 = vpack.c.bf16 %v417_v8, %v416_v7  ;;  %v422_v20 = vmax.f32 %v1239_v10, 0.0  ;;  %1312 = vmatpush3.bf16.msra.mxu0 %v1406_v34  ;;  %v1412_v7 = vld [vmem:[%s1649_s3 + $0x40] sm:$0xff]  }
 0x1f3   :  { %v381_v13 = vpop.f32.mrf.mxu1  ;;  %1313 = vmatprep.subr.bf16.mxu0 %v1407_v35 }
 0x1f4   :  { %1265 = vmatprep.mubr.bf16.mxu0 %v430_v11  ;;  %v420_v18 = vmax.f32 %v381_v13, 0.0 }
 0x1f5   :  { %v1240_v14 = vpop.f32.mrf.mxu1  ;;  %1266 = vmatmul.mubr.bf16.gmra.mxu0 %v431_v12 }
 0x1f6   :  { %v423_v15 = vmax.f32 %v1240_v14, 0.0  ;;  %1314 = vmatpush3.bf16.msra.mxu0 %v1407_v35 }
 0x1f7   :  { %v384_v17 = vpop.f32.mrf.mxu1  ;;  %1315 = vmatprep.subr.bf16.mxu0 %v1408_v36 }
 0x1f8   :  { %v421_v19 = vmax.f32 %v384_v17, 0.0  ;;  %v433_v23 = vpack.c.bf16 %v423_v15, %v422_v20 }
 0x1f9   :  { %v1243_v21 = vpop.f32.mrf.mxu1 }
 0x1fa   :  { %v432_v22 = vpack.c.bf16 %v421_v19, %v420_v18  ;;  %v426_v30 = vmax.f32 %v1243_v21, 0.0  ;;  %1316 = vmatpush3.bf16.msra.mxu0 %v1408_v36 }
 0x1fb   :  { %v397_v24 = vpop.f32.mrf.mxu1  ;;  %1317 = vmatprep.subr.bf16.mxu0 %v1409_v37 }
 0x1fc   :  { %1269 = vmatprep.mubr.bf16.mxu0 %v432_v22  ;;  %v424_v28 = vmax.f32 %v397_v24, 0.0 }
 0x1fd   :  { %v1244_v25 = vpop.f32.mrf.mxu1  ;;  %1270 = vmatmul.mubr.bf16.gmra.mxu0 %v433_v23 }
 0x1fe   :  { %v427_v26 = vmax.f32 %v1244_v25, 0.0  ;;  %1318 = vmatpush3.bf16.msra.mxu0 %v1409_v37 }
 0x1ff   :  { %v400_v27 = vpop.f32.mrf.mxu1  ;;  %1319 = vmatprep.subr.bf16.mxu0 %v1410_v5 }
 0x200   :  { %v425_v29 = vmax.f32 %v400_v27, 0.0  ;;  %v435_v32 = vpack.c.bf16 %v427_v26, %v426_v30 }
 0x202   :  { %v434_v31 = vpack.c.bf16 %v425_v29, %v424_v28  ;;  %1320 = vmatpush3.bf16.msra.mxu0 %v1410_v5 }
 0x203   :  { %1321 = vmatprep.subr.bf16.mxu0 %v1411_v6 }
 0x204   :  { %1273 = vmatprep.mubr.bf16.mxu0 %v434_v31 }
 0x205   :  { %1274 = vmatmul.mubr.bf16.gmra.mxu0 %v435_v32 }
 0x206   :  { %1322 = vmatpush3.bf16.msra.mxu0 %v1411_v6 }
 0x207   :  { %1323 = vmatprep.subr.bf16.mxu0 %v1412_v7 }
 0x20a   :  { %1324 = vmatpush3.bf16.msra.mxu0 %v1412_v7 }
 0x2ad   :  { %v1263_v38 = vpop.f32.mrf.mxu0 }
 0x2af   :  { %v534_v39 = vpop.f32.mrf.mxu0 }
 0x2b1   :  { %v1264_v40 = vpop.f32.mrf.mxu0 }
 0x2b2   :  { %v598_v3 = vpack.c.bf16 %v1264_v40, %v1263_v38 }
 0x2b3   :  { %v537_v41 = vpop.f32.mrf.mxu0 }
 0x2b4   :  { %v597_v4 = vpack.c.bf16 %v537_v41, %v534_v39 }
 0x2b5   :  { %v1267_v42 = vpop.f32.mrf.mxu0 }
 0x2b7   :  { %v550_v43 = vpop.f32.mrf.mxu0 }
 0x2b9   :  { %v1268_v44 = vpop.f32.mrf.mxu0 }
 0x2ba   :  { %v600_v1 = vpack.c.bf16 %v1268_v44, %v1267_v42 }
 0x2bb   :  { %v553_v45 = vpop.f32.mrf.mxu0 }
 0x2bc   :  { %v599_v2 = vpack.c.bf16 %v553_v45, %v550_v43 }
 0x2bd   :  { %v1271_v53 = vpop.f32.mrf.mxu0 }
 0x2bf   :  { %v566_v54 = vpop.f32.mrf.mxu0 }
 0x2c1   :  { %v1272_v55 = vpop.f32.mrf.mxu0 }
 0x2c2   :  { %v602_v63 = vpack.c.bf16 %v1272_v55, %v1271_v53 }
 0x2c3   :  { %v569_v56 = vpop.f32.mrf.mxu0 }
 0x2c4   :  { %v601_v0 = vpack.c.bf16 %v569_v56, %v566_v54 }
 0x2c5   :  { %v1275_v57 = vpop.f32.mrf.mxu0 }
 0x2c7   :  { %v582_v58 = vpop.f32.mrf.mxu0 }
 0x2c9   :  { %v1276_v59 = vpop.f32.mrf.mxu0 }
 0x2ca   :  { %v604_v60 = vpack.c.bf16 %v1276_v59, %v1275_v57 }
 0x2cb   :  { %v585_v61 = vpop.f32.mrf.mxu0 }
 0x2cc   :  { %v603_v62 = vpack.c.bf16 %v585_v61, %v582_v58  ;;  %1277 = vmatprep.subr.bf16.mxu1 %v604_v60 }
 0x2cd   :  { %1278 = vmatpush3.bf16.msra.mxu1 %v604_v60 }
 0x2ce   :  { %1279 = vmatprep.subr.bf16.mxu1 %v603_v62 }
 0x2d1   :  { %1280 = vmatpush3.bf16.msra.mxu1 %v603_v62 }
 0x2d2   :  { %1281 = vmatprep.subr.bf16.mxu1 %v602_v63 }
 0x2d5   :  { %1282 = vmatpush3.bf16.msra.mxu1 %v602_v63 }
 0x2d6   :  { %1283 = vmatprep.subr.bf16.mxu1 %v601_v0 }
 0x2d9   :  { %1284 = vmatpush3.bf16.msra.mxu1 %v601_v0 }
 0x2da   :  { %1285 = vmatprep.subr.bf16.mxu1 %v600_v1 }
 0x2dd   :  { %1286 = vmatpush3.bf16.msra.mxu1 %v600_v1 }
 0x2de   :  { %1287 = vmatprep.subr.bf16.mxu1 %v599_v2 }
 0x2e1   :  { %1288 = vmatpush3.bf16.msra.mxu1 %v599_v2 }
 0x2e2   :  { %1289 = vmatprep.subr.bf16.mxu1 %v598_v3 }
 0x2e5   :  { %1290 = vmatpush3.bf16.msra.mxu1 %v598_v3 }
 0x2e6   :  { %1291 = vmatprep.subr.bf16.mxu1 %v597_v4 }
 0x2e9   :  { %1292 = vmatpush3.bf16.msra.mxu1 %v597_v4 }
 0x2ec   :  { %1294 = vmatmul.mubr.bf16.vlgmr.msra.gmra.mxu1 %v1510_v46 }
 0x2ed   :  { %1297 = vmatprep.mubr.bf16.mxu1 %v1515_v47 }
 0x2f4   :  { %1298 = vmatmul.mubr.bf16.gmra.mxu1 %v1522_v48 }
 0x2f5   :  { %1301 = vmatprep.mubr.bf16.mxu1 %v1527_v49 }
 0x2fc   :  { %1302 = vmatmul.mubr.bf16.gmra.mxu1 %v1534_v50 }
 0x2fd   :  { %1305 = vmatprep.mubr.bf16.mxu1 %v1539_v51 }
 0x304   :  { %1306 = vmatmul.mubr.bf16.gmra.mxu1 %v1546_v52 }
 0x305   :  { %1357 = vmatprep.mubr.bf16.mxu1 %v1489_v16 }
 0x3ac   :  { %v1295_v8 = vpop.f32.mrf.mxu1 }
 0x3ad   :  { %v704_v14 = vmax.f32 %v1295_v8, 0.0 }
 0x3ae   :  { %v639_v16 = vpop.f32.mrf.mxu1 }
 0x3af   :  { %v702_v12 = vmax.f32 %v639_v16, 0.0 }
 0x3b0   :  { %v1296_v9 = vpop.f32.mrf.mxu1 }
 0x3b1   :  { %v705_v10 = vmax.f32 %v1296_v9, 0.0 }
 0x3b2   :  { %v642_v11 = vpop.f32.mrf.mxu1 }
 0x3b3   :  { %v703_v13 = vmax.f32 %v642_v11, 0.0  ;;  %v719_v18 = vpack.c.bf16 %v705_v10, %v704_v14 }
 0x3b4   :  { %v1299_v15 = vpop.f32.mrf.mxu1 }
 0x3b5   :  { %v718_v17 = vpack.c.bf16 %v703_v13, %v702_v12  ;;  %v708_v25 = vmax.f32 %v1299_v15, 0.0 }
 0x3b6   :  { %v655_v19 = vpop.f32.mrf.mxu1 }
 0x3b7   :  { %1325 = vmatprep.mubr.bf16.mxu0 %v718_v17  ;;  %v706_v23 = vmax.f32 %v655_v19, 0.0 }
 0x3b8   :  { %v1300_v20 = vpop.f32.mrf.mxu1  ;;  %1326 = vmatmul.mubr.bf16.vlgmr.msra.gmra.mxu0 %v719_v18 }
 0x3b9   :  { %v709_v21 = vmax.f32 %v1300_v20, 0.0 }
 0x3ba   :  { %v658_v22 = vpop.f32.mrf.mxu1 }
 0x3bb   :  { %v707_v24 = vmax.f32 %v658_v22, 0.0  ;;  %v721_v28 = vpack.c.bf16 %v709_v21, %v708_v25 }
 0x3bc   :  { %v1303_v26 = vpop.f32.mrf.mxu1 }
 0x3bd   :  { %v720_v27 = vpack.c.bf16 %v707_v24, %v706_v23  ;;  %v712_v35 = vmax.f32 %v1303_v26, 0.0 }
 0x3be   :  { %v671_v29 = vpop.f32.mrf.mxu1 }
 0x3bf   :  { %1329 = vmatprep.mubr.bf16.mxu0 %v720_v27  ;;  %v710_v33 = vmax.f32 %v671_v29, 0.0 }
 0x3c0   :  { %v1304_v30 = vpop.f32.mrf.mxu1  ;;  %1330 = vmatmul.mubr.bf16.gmra.mxu0 %v721_v28 }
 0x3c1   :  { %v713_v31 = vmax.f32 %v1304_v30, 0.0 }
 0x3c2   :  { %v674_v32 = vpop.f32.mrf.mxu1 }
 0x3c3   :  { %v711_v34 = vmax.f32 %v674_v32, 0.0  ;;  %v723_v38 = vpack.c.bf16 %v713_v31, %v712_v35 }
 0x3c4   :  { %v1307_v36 = vpop.f32.mrf.mxu1 }
 0x3c5   :  { %v722_v37 = vpack.c.bf16 %v711_v34, %v710_v33  ;;  %v716_v45 = vmax.f32 %v1307_v36, 0.0 }
 0x3c6   :  { %v687_v39 = vpop.f32.mrf.mxu1 }
 0x3c7   :  { %1333 = vmatprep.mubr.bf16.mxu0 %v722_v37  ;;  %v714_v43 = vmax.f32 %v687_v39, 0.0 }
 0x3c8   :  { %v1308_v40 = vpop.f32.mrf.mxu1  ;;  %1334 = vmatmul.mubr.bf16.gmra.mxu0 %v723_v38 }
 0x3c9   :  { %v717_v41 = vmax.f32 %v1308_v40, 0.0 }
 0x3ca   :  { %v690_v42 = vpop.f32.mrf.mxu1 }
 0x3cb   :  { %v715_v44 = vmax.f32 %v690_v42, 0.0  ;;  %v725_v54 = vpack.c.bf16 %v717_v41, %v716_v45 }
 0x3cd   :  { %v724_v53 = vpack.c.bf16 %v715_v44, %v714_v43 }
 0x3cf   :  { %1337 = vmatprep.mubr.bf16.mxu0 %v724_v53 }
 0x3d0   :  { %1338 = vmatmul.mubr.bf16.gmra.mxu0 %v725_v54 }
 0x478   :  { %v1327_v55 = vpop.f32.mrf.mxu0 }
 0x47a   :  { %v825_v56 = vpop.f32.mrf.mxu0 }
 0x47c   :  { %v1328_v57 = vpop.f32.mrf.mxu0 }
 0x47d   :  { %v889_v12 = vpack.c.bf16 %v1328_v57, %v1327_v55 }
 0x47e   :  { %v828_v58 = vpop.f32.mrf.mxu0 }
 0x47f   :  { %v888_v13 = vpack.c.bf16 %v828_v58, %v825_v56 }
 0x480   :  { %v1331_v59 = vpop.f32.mrf.mxu0 }
 0x482   :  { %v841_v60 = vpop.f32.mrf.mxu0 }
 0x484   :  { %v1332_v61 = vpop.f32.mrf.mxu0 }
 0x485   :  { %v891_v10 = vpack.c.bf16 %v1332_v61, %v1331_v59 }
 0x486   :  { %v844_v62 = vpop.f32.mrf.mxu0 }
 0x487   :  { %v890_v11 = vpack.c.bf16 %v844_v62, %v841_v60 }
 0x488   :  { %v1335_v63 = vpop.f32.mrf.mxu0 }
 0x48a   :  { %v857_v0 = vpop.f32.mrf.mxu0 }
 0x48c   :  { %v1336_v1 = vpop.f32.mrf.mxu0 }
 0x48d   :  { %v893_v16 = vpack.c.bf16 %v1336_v1, %v1335_v63 }
 0x48e   :  { %v860_v2 = vpop.f32.mrf.mxu0 }
 0x48f   :  { %v892_v9 = vpack.c.bf16 %v860_v2, %v857_v0 }
 0x490   :  { %v1339_v3 = vpop.f32.mrf.mxu0 }
 0x492   :  { %v873_v4 = vpop.f32.mrf.mxu0 }
 0x494   :  { %v1340_v5 = vpop.f32.mrf.mxu0 }
 0x495   :  { %v895_v6 = vpack.c.bf16 %v1340_v5, %v1339_v3 }
 0x496   :  { %v876_v7 = vpop.f32.mrf.mxu0 }
 0x497   :  { %v894_v8 = vpack.c.bf16 %v876_v7, %v873_v4  ;;  %1341 = vmatprep.subr.bf16.mxu1 %v895_v6 }
 0x498   :  { %1342 = vmatpush3.bf16.msra.mxu1 %v895_v6 }
 0x499   :  { %1343 = vmatprep.subr.bf16.mxu1 %v894_v8 }
 0x49c   :  { %1344 = vmatpush3.bf16.msra.mxu1 %v894_v8 }
 0x49d   :  { %1345 = vmatprep.subr.bf16.mxu1 %v893_v16 }
 0x4a0   :  { %1346 = vmatpush3.bf16.msra.mxu1 %v893_v16 }
 0x4a1   :  { %1347 = vmatprep.subr.bf16.mxu1 %v892_v9 }
 0x4a4   :  { %1348 = vmatpush3.bf16.msra.mxu1 %v892_v9 }
 0x4a5   :  { %1349 = vmatprep.subr.bf16.mxu1 %v891_v10 }
 0x4a8   :  { %1350 = vmatpush3.bf16.msra.mxu1 %v891_v10 }
 0x4a9   :  { %1351 = vmatprep.subr.bf16.mxu1 %v890_v11 }
 0x4ac   :  { %1352 = vmatpush3.bf16.msra.mxu1 %v890_v11 }
 0x4ad   :  { %1353 = vmatprep.subr.bf16.mxu1 %v889_v12 }
 0x4b0   :  { %1354 = vmatpush3.bf16.msra.mxu1 %v889_v12 }
 0x4b1   :  { %1355 = vmatprep.subr.bf16.mxu1 %v888_v13 }
 0x4b4   :  { %1356 = vmatpush3.bf16.msra.mxu1 %v888_v13 }
 0x4b7   :  { %1358 = vmatmul.mubr.bf16.vlgmr.msra.gmra.mxu1 %v1510_v46 }
 0x4b8   :  { %1361 = vmatprep.mubr.bf16.mxu1 %v1515_v47 }
 0x4bf   :  { %1362 = vmatmul.mubr.bf16.gmra.mxu1 %v1522_v48 }
 0x4c0   :  { %1365 = vmatprep.mubr.bf16.mxu1 %v1527_v49 }
 0x4c7   :  { %1366 = vmatmul.mubr.bf16.gmra.mxu1 %v1534_v50 }
 0x4c8   :  { %1369 = vmatprep.mubr.bf16.mxu1 %v1539_v51 }
 0x4cf   :  { %1370 = vmatmul.mubr.bf16.gmra.mxu1 %v1546_v52 }
 0x577   :  { %v1359_v14 = vpop.f32.mrf.mxu1 }
 0x578   :  { %v995_v15 = vmax.f32 %v1359_v14, 0.0 }
 0x579   :  { %v930_v17 = vpop.f32.mrf.mxu1 }
 0x57a   :  { %1011 = vst [vmem:[%s1650_s4 + $0x10] sm:$0xff] %v995_v15  ;;  %v993_v46 = vmax.f32 %v930_v17, 0.0 }
 0x57b   :  { %v1360_v18 = vpop.f32.mrf.mxu1 }
 0x57c   :  { %1009 = vst [vmem:[%s1650_s4] sm:$0xff] %v993_v46  ;;  %v996_v47 = vmax.f32 %v1360_v18, 0.0 }
 0x57d   :  { %v933_v48 = vpop.f32.mrf.mxu1 }
 0x57e   :  { %1012 = vst [vmem:[%s1650_s4 + $0x18] sm:$0xff] %v996_v47  ;;  %v994_v49 = vmax.f32 %v933_v48, 0.0 }
 0x57f   :  { %v1363_v50 = vpop.f32.mrf.mxu1 }
 0x580   :  { %1010 = vst [vmem:[%s1650_s4 + $0x8] sm:$0xff] %v994_v49  ;;  %v999_v51 = vmax.f32 %v1363_v50, 0.0 }
 0x581   :  { %v946_v52 = vpop.f32.mrf.mxu1 }
 0x582   :  { %1015 = vst [vmem:[%s1650_s4 + $0x30] sm:$0xff] %v999_v51  ;;  %v997_v19 = vmax.f32 %v946_v52, 0.0 }
 0x583   :  { %v1364_v20 = vpop.f32.mrf.mxu1 }
 0x584   :  { %1013 = vst [vmem:[%s1650_s4 + $0x20] sm:$0xff] %v997_v19  ;;  %v1000_v21 = vmax.f32 %v1364_v20, 0.0 }
 0x585   :  { %v949_v22 = vpop.f32.mrf.mxu1 }
 0x586   :  { %1016 = vst [vmem:[%s1650_s4 + $0x38] sm:$0xff] %v1000_v21  ;;  %v998_v23 = vmax.f32 %v949_v22, 0.0 }
 0x587   :  { %v1367_v24 = vpop.f32.mrf.mxu1 }
 0x588   :  { %1014 = vst [vmem:[%s1650_s4 + $0x28] sm:$0xff] %v998_v23  ;;  %v1003_v25 = vmax.f32 %v1367_v24, 0.0 }
 0x589   :  { %v962_v26 = vpop.f32.mrf.mxu1 }
 0x58a   :  { %1019 = vst [vmem:[%s1650_s4 + $0x50] sm:$0xff] %v1003_v25  ;;  %v1001_v27 = vmax.f32 %v962_v26, 0.0 }
 0x58b   :  { %v1368_v28 = vpop.f32.mrf.mxu1 }
 0x58c   :  { %1017 = vst [vmem:[%s1650_s4 + $0x40] sm:$0xff] %v1001_v27  ;;  %v1004_v29 = vmax.f32 %v1368_v28, 0.0 }
 0x58d   :  { %v965_v30 = vpop.f32.mrf.mxu1 }
 0x58e   :  { %1020 = vst [vmem:[%s1650_s4 + $0x58] sm:$0xff] %v1004_v29  ;;  %v1002_v31 = vmax.f32 %v965_v30, 0.0 }
 0x58f   :  { %v1371_v32 = vpop.f32.mrf.mxu1 }
 0x590   :  { %1018 = vst [vmem:[%s1650_s4 + $0x48] sm:$0xff] %v1002_v31  ;;  %v1007_v33 = vmax.f32 %v1371_v32, 0.0 }
 0x591   :  { %v978_v34 = vpop.f32.mrf.mxu1 }
 0x592   :  { %1023 = vst [vmem:[%s1650_s4 + $0x70] sm:$0xff] %v1007_v33  ;;  %v1005_v35 = vmax.f32 %v978_v34, 0.0 }
 0x593   :  { %v1372_v36 = vpop.f32.mrf.mxu1 }
 0x594   :  { %1021 = vst [vmem:[%s1650_s4 + $0x60] sm:$0xff] %v1005_v35  ;;  %v1008_v37 = vmax.f32 %v1372_v36, 0.0 }
 0x595   :  { %v981_v38 = vpop.f32.mrf.mxu1 }
 0x596   :  { %1024 = vst [vmem:[%s1650_s4 + $0x78] sm:$0xff] %v1008_v37  ;;  %v1006_v39 = vmax.f32 %v981_v38, 0.0 }
 0x598   :  { %1022 = vst [vmem:[%s1650_s4 + $0x68] sm:$0xff] %v1006_v39 }

</bundles_post_ra>
